<compile_context>
chip_gen: v5e
topology: v5e:2x2
jax: 0.10.0
libtpu: 0.0.40
codegen_flags: <defaults>
</compile_context>

<pallas_src>
import jax
import jax.numpy as jnp
from jax.experimental import pallas as pl
from jax.experimental.pallas import tpu as pltpu


def _fermi_dirac_kernel(params_ref, dist_ref, out_ref):
    # params_ref: SMEM f32[2] = [r, 1/t]  (scalar broadcast is free on the VPU)
    r = params_ref[0]
    inv_t = params_ref[1]
    d = dist_ref[...].astype(jnp.float32)
    x = (r - d) * inv_t
    # sigmoid(x) == 0.5 * tanh(0.5 * x) + 0.5 : one EUP transcendental/element.
    out_ref[...] = (0.5 * jnp.tanh(0.5 * x) + 0.5).astype(out_ref.dtype)


_LANE = 128
_COL_CHOICES = (2048, 1024, 512, 256, 128)  # lane-dense widths, widest first


def _choose_cols(total, pad_quantum):
    """Pick a lane-dense column count; return (cols, padded_total)."""
    for c in _COL_CHOICES:
        if total % c == 0:
            return c, total  # exact fit, no padding
    # Ragged: pad the flat array up to a multiple of (sublane_mult * 128) so the
    # slab is lane-dense (full-width vst) and fully sublane-utilized.
    padded = ((total + pad_quantum - 1) // pad_quantum) * pad_quantum
    for c in _COL_CHOICES:
        if padded % c == 0:
            return c, padded
    return _LANE, padded  # unreachable (pad_quantum is a multiple of 128)


def fermi_dirac_decoder(dist, r=2.0, t=1.0):
    """probs = sigmoid((r - dist) / t), same shape & dtype as dist."""
    orig_shape = dist.shape
    orig_dtype = dist.dtype
    total = int(dist.size)
    if total == 0:
        return dist

    itemsize = jnp.dtype(orig_dtype).itemsize
    # Minimum sublane multiple per dtype: f32 -> 8, bf16 -> 16, int8/fp8 -> 32.
    sub_mult = max(8, 32 // max(1, itemsize))
    pad_quantum = sub_mult * _LANE

    # ---- lane-dense 2-D presentation (pad ragged tails, never narrow dims) --
    cols, padded_total = _choose_cols(total, pad_quantum)
    flat = dist.reshape(-1)
    if padded_total != total:
        flat = jnp.pad(flat, (0, padded_total - total))
    slab = flat.reshape(padded_total // cols, cols)
    M2, N2 = slab.shape

    # ---- tile selection: lane axis first, ~2 MiB per block -------------------
    # Double-buffered in + out => VMEM footprint ~ 4 * block_bytes = ~8 MiB,
    # safe under v5e's 16 MiB scoped default and v6e/v7x's 32 MiB defaults.
    if N2 <= _LANE:
        tn = N2
    else:
        tn = max(_LANE, (min(N2, 2048) // _LANE) * _LANE)

    target_block_bytes = 2 * 1024 * 1024
    rows_budget = max(1, target_block_bytes // (tn * itemsize))
    if M2 <= sub_mult:
        tm = M2  # full-extent block along sublanes (always legal)
    else:
        tm = max(sub_mult, (min(M2, rows_budget) // sub_mult) * sub_mult)

    # ---- guarantee enough grid blocks for megacore sharding (v7x: 2 TCs) -----
    MIN_BLOCKS = 4  # >= 2 blocks per TensorCore on dual-core parts
    gm, gn = pl.cdiv(M2, tm), pl.cdiv(N2, tn)
    if gm * gn < MIN_BLOCKS and M2 > sub_mult:
        for want_gm in range(pl.cdiv(MIN_BLOCKS, gn), 1, -1):
            cap = (M2 // want_gm // sub_mult) * sub_mult
            if cap >= sub_mult:
                tm = min(tm, cap)
                break
    grid = (pl.cdiv(M2, tm), pl.cdiv(N2, tn))

    # Runtime scalars live in SMEM: one compilation regardless of (r, t).
    params = jnp.array([r, 1.0 / t], dtype=jnp.float32)

    cost = pl.CostEstimate(
        flops=3 * total,
        transcendentals=total,
        bytes_accessed=2 * padded_total * itemsize,
    )

    out2d = pl.pallas_call(
        _fermi_dirac_kernel,
        out_shape=jax.ShapeDtypeStruct((M2, N2), orig_dtype),
        grid=grid,
        in_specs=[
            pl.BlockSpec(memory_space=pltpu.SMEM),          # [r, 1/t] scalars
            pl.BlockSpec((tm, tn), lambda i, j: (i, j)),    # dist tile
        ],
        out_specs=pl.BlockSpec((tm, tn), lambda i, j: (i, j)),
        compiler_params=pltpu.CompilerParams(
            dimension_semantics=("parallel", "parallel")
        ),
        cost_estimate=cost,
    )(params, slab)

    out_flat = out2d.reshape(-1)
    if padded_total != total:
        out_flat = out_flat[:total]
    return out_flat.reshape(orig_shape)


if __name__ == "__main__":
    key = jax.random.PRNGKey(0)
    r, t = 2.0, 1.0

    def ref_fn(x, r, t):
        return jax.nn.sigmoid((r - x) / t)

    # Main demo shape: pairwise distances (batch=2, n_nodes=16, n_nodes=16).
    dist = jax.random.uniform(key, (2, 16, 16), dtype=jnp.float32) * 5.0
    probs = jax.block_until_ready(fermi_dirac_decoder(dist, r=r, t=t))
    assert probs.shape == dist.shape and probs.dtype == dist.dtype
    assert jnp.allclose(probs, ref_fn(dist, r, t), atol=1e-5, rtol=1e-5)

    # Lane-dense tiled path with >= 4 row blocks (exercises the v7x clamp).
    k1, k2 = jax.random.split(key)
    big = jax.random.uniform(k1, (4, 256, 256), dtype=jnp.float32) * 5.0
    out_big = jax.block_until_ready(fermi_dirac_decoder(big, r=r, t=0.5))
    assert jnp.allclose(out_big, ref_fn(big, r, 0.5), atol=1e-5, rtol=1e-5)

    # Ragged (non-128-divisible) path: now padded + lane-dense + sliced back.
    odd = jax.random.uniform(k2, (3, 7, 100), dtype=jnp.float32) * 5.0
    out_odd = jax.block_until_ready(fermi_dirac_decoder(odd, r=r, t=t))
    assert jnp.allclose(out_odd, ref_fn(odd, r, t), atol=1e-5, rtol=1e-5)

    print("KERNEL_OK")
</pallas_src>

<mosaic_0001>
module attributes {stable_mosaic.version = 11 : i64} {
  func.func @_fermi_dirac_kernel(%arg0: i32, %arg1: i32, %arg2: memref<2xf32, #tpu.memory_space<smem>>, %arg3: memref<1x512xf32, #tpu.memory_space<vmem>>, %arg4: memref<1x512xf32, #tpu.memory_space<vmem>>) attributes {dimension_semantics = [#tpu.dimension_semantics<parallel>, #tpu.dimension_semantics<parallel>], iteration_bounds = array<i64: 1, 1>, scalar_prefetch = 0 : i64, scratch_operands = 0 : i64, tpu.core_type = #tpu.core_type<tc>, window_params = [{transform_indices = @transform_0, window_bounds = array<i64: 2>}, {transform_indices = @transform_1, window_bounds = array<i64: 1, 512>}, {transform_indices = @transform_2, window_bounds = array<i64: 1, 512>}]} {
    %c0 = arith.constant 0 : index
    %0 = memref.load %arg2[%c0] : memref<2xf32, #tpu.memory_space<smem>>
    %c1 = arith.constant 1 : index
    %1 = memref.load %arg2[%c1] : memref<2xf32, #tpu.memory_space<smem>>
    %c0_0 = arith.constant 0 : index
    %c0_1 = arith.constant 0 : index
    %2 = vector.load %arg3[%c0_0, %c0_1] : memref<1x512xf32, #tpu.memory_space<vmem>>, vector<1x512xf32>
    %3 = vector.broadcast %0 : f32 to vector<1x512xf32>
    %4 = arith.subf %3, %2 : vector<1x512xf32>
    %5 = vector.broadcast %1 : f32 to vector<1x512xf32>
    %6 = arith.mulf %4, %5 : vector<1x512xf32>
    %cst = arith.constant 5.000000e-01 : f32
    %7 = vector.broadcast %cst : f32 to vector<1x512xf32>
    %8 = arith.mulf %7, %6 : vector<1x512xf32>
    %9 = math.tanh %8 : vector<1x512xf32>
    %cst_2 = arith.constant 5.000000e-01 : f32
    %10 = vector.broadcast %cst_2 : f32 to vector<1x512xf32>
    %11 = arith.mulf %10, %9 : vector<1x512xf32>
    %cst_3 = arith.constant 5.000000e-01 : f32
    %12 = vector.broadcast %cst_3 : f32 to vector<1x512xf32>
    %13 = arith.addf %11, %12 : vector<1x512xf32>
    %c0_4 = arith.constant 0 : index
    %c0_5 = arith.constant 0 : index
    %14 = vector.load %arg4[%c0_4, %c0_5] : memref<1x512xf32, #tpu.memory_space<vmem>>, vector<1x512xf32>
    tpu.vector_store %arg4[%c0_4, %c0_5], %13 {strides = array<i32>} : memref<1x512xf32, #tpu.memory_space<vmem>>, vector<1x512xf32>,
    return
  }
  func.func @transform_0(%arg0: i32, %arg1: i32) -> i32 {
    %c0_i32 = arith.constant 0 : i32
    %c0_i32_0 = arith.constant 0 : i32
    return %c0_i32 : i32
  }
  func.func @transform_1(%arg0: i32, %arg1: i32) -> (i32, i32) {
    %c0_i32 = arith.constant 0 : i32
    return %arg0, %arg1 : i32, i32
  }
  func.func @transform_2(%arg0: i32, %arg1: i32) -> (i32, i32) {
    %c0_i32 = arith.constant 0 : i32
    return %arg0, %arg1 : i32, i32
  }
}

</mosaic_0001>

<bundles_post_ra>
// kernel: tpu_custom_call.1
= control target key start
LH: loop header
LB: loop body
LE: loop exit
PB: predicated region body
PF: predicated region fallthrough
CT: control target
= control target key end

     0   :  { %7 = vsyncpa [#allocation5], 0  ;;  %s172_s0 = inlined_call_operand.hbm [shape: f32[2], index: 0, kind: input, shape index: {}]   ;;  %s173_s1 = inlined_call_operand.hbm [shape: f32[1,512], index: 1, kind: input, shape index: {}]   ;;  %s174_s2 = inlined_call_operand.hbm [shape: f32[1,512], index: 2, kind: output, shape index: {}]  }
   0x1   :  { %8 = vsyncpa [#allocation3], 0 }
   0x2   :  { %9 = vsyncpa [#allocation4], 0  ;;  %s15_s11 = sshll.u32 %s172_s0, 4  ;;  %s24_s14 = sshll.u32 %s173_s1, 4  ;;  %s16_s11 = int_to_ptr.hbm [resolvable:$true] %s15_s11  ;;  %s25_s14 = int_to_ptr.hbm [resolvable:$true] %s24_s14 }
   0x3   :  { %s145_s15 = smov [#allocation2]   ;;  %s146_s16 = smov [#allocation6]  }
   0x4   :  { %18 = dma.hbm_to_smem %s16_s11, 16, %s145_s15, [#allocation5]  }
   0x5   :  { %s26_s17 = sshll.u32 %s146_s16, 4  ;;  %s27_s17 = int_to_ptr.vmem [resolvable:$true] %s26_s17 }
   0x6   :  { %29 = dma.hbm_to_vmem [thread:$0]  %s25_s14, 64, %s27_s17, [#allocation3]  }
   0x7   :  { %139 = dma.done.wait [#allocation5], 16  }
   0x8   :  { %140 = vsyncadd [#allocation5], 4294967280 }
   0x9   :  { %141 = dma.done.wait [#allocation3], 64  }
   0xa   :  { %142 = vsyncadd [#allocation3], 4294967232 }
   0xb   :  { %38 = sfence }
   0xc   :  { %s39_s18 = sld [smem:[#allocation2]]  ;;  %v41_v0 = vld [vmem:[#allocation6] sm:$0xf]  ;;  %v50_v6 = vlaneseq  ;;  %s147_s0 = smov [#allocation7]  }
   0xd   :  { %s73_s19 = sld [smem:[#allocation2 + $0x1]]  ;;  %s60_s1 = sshll.u32 %s147_s0, 4  ;;  %s61_s1 = int_to_ptr.vmem [resolvable:$true] %s60_s1 }
   0xe   :  { %s62_s22 = sshll.u32 %s174_s2, 4  ;;  %vm52_vm0 = vcmp.lt.s32.totalorder %v50_v6, 512  ;;  %s63_s22 = int_to_ptr.hbm [resolvable:$true] %s62_s22 }
  0x12   :  { %v42_v1 = vstv %s39_s18 }
  0x13   :  { %v43_v2 = vsub.f32 %v42_v1, %v41_v0  ;;  %v44_v3 = vstv %s73_s19 }
  0x15   :  { %v45_v4 = vmul.f32 %v44_v3, %v43_v2 }
  0x17   :  { %v46_v5 = vmul.f32 0.5, %v45_v4 }
  0x19   :  { %77 = vtanh.f32 %v46_v5 }
  0x1f   :  { %v78_v7 = vpop.eup %77 }
  0x20   :  { %v48_v8 = vmul.f32 0.5, %v78_v7 }
  0x22   :  { %v49_v9 = vadd.f32 0.5, %v48_v8 }
  0x24   :  { %54 = vst.msk [vmem:[#allocation7] sm:$0xf] %vm52_vm0, %v49_v9 }
  0x25   :  { %65 = dma.vmem_to_hbm [thread:$0]  %s61_s1, 64, %s63_s22, [#allocation4]  }
  0x26   :  { %143 = dma.done.wait [#allocation4], 64  }
  0x27   :  { %144 = vsyncadd [#allocation4], 4294967232 }
  0x28   :  { %70 = vsyncpa [#allocation3], 1 }
  0x29   :  { %71 = vsyncpa [#allocation4], 1 }
  0x2a   :  { %72 = vsyncpa [#allocation5], 1 }

</bundles_post_ra>
